<compile_context>
chip_gen: v7x
topology: tpu7x:2x2x1
jax: 0.10.0
libtpu: 0.0.40
codegen_flags: <defaults>
</compile_context>

<pallas_src>
import functools

import jax
import jax.numpy as jnp
from jax.experimental import pallas as pl
from jax.experimental.pallas import tpu as pltpu

_LANES = 128
_COORDS = 4  # x1, y1, x2, y2 per box


def _box_loss_kernel(o_ref, t_ref, partial_ref, *, epsilon, rows_last):
    # Stream in the native dtype, compute in f32.
    o = o_ref[...].astype(jnp.float32)  # (tile_r, 128), lanes interleave (x1,y1,x2,y2)
    t = t_ref[...].astype(jnp.float32)

    shift2 = _LANES - 2  # roll so result[j] = x[j + 2]
    shift1 = _LANES - 1  # roll so result[j] = x[j + 1]

    ro = pltpu.roll(o, shift=shift2, axis=1)  # lane j holds o[j + 2]
    rt = pltpu.roll(t, shift=shift2, axis=1)

    # Clamped intersection extents at lane 4i (x) and 4i+1 (y); other lanes are garbage
    # and never reach a 4i lane below.
    d = jnp.maximum(jnp.minimum(ro, rt) - jnp.maximum(o, t), 0.0)
    inter = d * pltpu.roll(d, shift=shift1, axis=1)  # lane 4i: delx * dely

    d_o = ro - o  # lane 4i: x2-x1, lane 4i+1: y2-y1
    d_t = rt - t
    a1 = d_o * pltpu.roll(d_o, shift=shift1, axis=1)  # lane 4i: area(output)
    a2 = d_t * pltpu.roll(d_t, shift=shift1, axis=1)  # lane 4i: area(target)

    union = a1 + a2 - inter
    # EUP approximate reciprocal instead of a VALU-heavy divide (EUP slot is idle here).
    iou = inter * pl.reciprocal(union + epsilon, approx=True)  # valid at lanes 4i only

    # Single (1,128) lane-constant mask, broadcast in the select (no full-tile iota chain).
    lane = jax.lax.broadcasted_iota(jnp.int32, (1, _LANES), 1)
    lane_mask = (lane % _COORDS) == 0
    iou_lanes = jnp.where(lane_mask, iou, 0.0)

    if rows_last == 0:
        # Every tile is full: no bounds bookkeeping in the hot path.
        partial_ref[...] = jnp.sum(iou_lanes, axis=0, keepdims=True)
    else:
        is_last = pl.program_id(0) == pl.num_programs(0) - 1

        @pl.when(jnp.logical_not(is_last))
        def _():
            partial_ref[...] = jnp.sum(iou_lanes, axis=0, keepdims=True)

        @pl.when(is_last)
        def _():
            # Only the final (partial) block pays for a row mask; rows >= rows_last are
            # out-of-bounds reads (unspecified data) and are selected away before the sum.
            row = jax.lax.broadcasted_iota(jnp.int32, (iou_lanes.shape[0], 1), 0)
            partial_ref[...] = jnp.sum(
                jnp.where(row < rows_last, iou_lanes, 0.0), axis=0, keepdims=True
            )


def _sublane_multiple(dtype):
    # Minimum second-minor tile: f32 -> 8, bf16/f16 -> 16, int8/fp8 -> 32.
    return {1: 32, 2: 16}.get(jnp.dtype(dtype).itemsize, 8)


def _choose_tile_r(r, requested, row_mult):
    """Rows per grid step for the (r, 128) slab."""
    if r <= row_mult:
        return r  # single full-extent block
    if requested is None:
        # >= ~4 grid steps (pipelining + 2 steps per TC for v7x megacore) with big DMAs,
        # capped at 8192 rows (~4 MiB per array per pipeline buffer).
        tile_r = min(8192, pl.cdiv(r, 4))
    else:
        tile_r = int(requested)
    tile_r = max(row_mult, min(tile_r, r))
    if tile_r >= r:
        # Guarantee >= 2 grid steps so the "parallel" axis shards across both v7x TensorCores.
        tile_r = pl.cdiv(r, 2)
    tile_r = max(row_mult, (tile_r // row_mult) * row_mult)
    return min(tile_r, r)


def _iou_sum_ref(output, target, epsilon=1e-07):
    """Sum of per-box IoUs (f32), mirroring the PyTorch Box_Loss math."""
    o = output.astype(jnp.float32)
    t = target.astype(jnp.float32)
    minx = jnp.maximum(o[:, 0], t[:, 0])
    miny = jnp.maximum(o[:, 1], t[:, 1])
    maxx = jnp.minimum(o[:, 2], t[:, 2])
    maxy = jnp.minimum(o[:, 3], t[:, 3])
    delx = jnp.maximum(maxx - minx, 0.0)
    dely = jnp.maximum(maxy - miny, 0.0)
    intersection = delx * dely
    a1 = (o[:, 2] - o[:, 0]) * (o[:, 3] - o[:, 1])
    a2 = (t[:, 2] - t[:, 0]) * (t[:, 3] - t[:, 1])
    union = a1 + a2 - intersection
    return jnp.sum(intersection / (union + epsilon))


def _box_loss_ref(output, target, epsilon=1e-07):
    """Pure-JAX reference mirroring PyTorch Box_Loss.forward exactly."""
    n = output.shape[0]
    return 1.0 - _iou_sum_ref(output, target, epsilon) / (jnp.float32(n) + jnp.float32(epsilon))


@functools.partial(jax.jit, static_argnames=("epsilon", "tile_r"))
def _box_loss_pallas(output, target, epsilon=1e-07, tile_r=None):
    """Pallas path. output, target: [N, 4] boxes (x1, y1, x2, y2), any float dtype."""
    assert output.shape == target.shape and output.shape[-1] == _COORDS
    n = int(output.shape[0])
    epsilon = float(epsilon)

    total = _COORDS * n
    r = total // _LANES              # full (·,128) rows streamed by the kernel
    n_main = (r * _LANES) // _COORDS  # boxes covered by those rows (multiple of 32)
    n_tail = n - n_main               # < 32 leftover boxes -> fused scalar path (no jnp.pad copy)

    iou_sum = jnp.float32(0.0)

    if r > 0:
        # Zero-copy (under jit) row-major views of the native layout — no transpose, no cast.
        o2 = output[:n_main].reshape(r, _LANES)
        t2 = target[:n_main].reshape(r, _LANES)

        row_mult = max(_sublane_multiple(output.dtype), _sublane_multiple(target.dtype))
        tr = _choose_tile_r(r, tile_r, row_mult)
        num_tiles = pl.cdiv(r, tr)
        rows_last = r - (num_tiles - 1) * tr
        rows_last = 0 if rows_last == tr else rows_last  # 0 => all tiles are full

        kernel = functools.partial(_box_loss_kernel, epsilon=epsilon, rows_last=rows_last)

        partials = pl.pallas_call(
            kernel,
            out_shape=jax.ShapeDtypeStruct((num_tiles, 1, _LANES), jnp.float32),
            grid=(num_tiles,),
            in_specs=[
                pl.BlockSpec((tr, _LANES), lambda i: (i, 0)),
                pl.BlockSpec((tr, _LANES), lambda i: (i, 0)),
            ],
            out_specs=pl.BlockSpec((None, 1, _LANES), lambda i: (i, 0, 0)),
            compiler_params=pltpu.CompilerParams(
                dimension_semantics=("parallel",),       # independent tiles -> megacore on v7x
                vmem_limit_bytes=48 * 1024 * 1024,       # <= ~17 MiB used even at tile_r=8192
            ),
        )(o2, t2)
        iou_sum = iou_sum + jnp.sum(partials)

    if n_tail > 0:
        iou_sum = iou_sum + _iou_sum_ref(output[n_main:], target[n_main:], epsilon)

    # Finalize exactly like the reference: 1 - sum(iou) / (n + eps).
    return 1.0 - iou_sum / (jnp.float32(n) + jnp.float32(epsilon))


@functools.partial(jax.jit, static_argnames=("epsilon", "min_boxes_for_pallas", "tile_r"))
def box_loss(output, target, epsilon=1e-07, *, min_boxes_for_pallas=1024, tile_r=None):
    """JAX equivalent of Box_Loss.forward(output, target, epsilon)."""
    if output.shape[0] < min_boxes_for_pallas:
        # Launch/grid-step overhead dominates at tiny N; XLA fusion is already optimal there.
        return _box_loss_ref(output, target, epsilon)
    return _box_loss_pallas(output, target, epsilon=epsilon, tile_r=tile_r)


if __name__ == "__main__":
    key = jax.random.PRNGKey(0)

    def make_boxes(k, n, dtype=jnp.float32):
        k1, k2 = jax.random.split(k)
        xy1 = jax.random.uniform(k1, (n, 2), jnp.float32, 0.0, 0.5)
        wh = jax.random.uniform(k2, (n, 2), jnp.float32, 0.1, 0.5)
        return jnp.concatenate([xy1, xy1 + wh], axis=1).astype(dtype)  # x2 > x1, y2 > y1

    # (n_boxes, tile_r, dtype):
    #   auto-tile (>=2 steps), requested-tile >= r (forced 2-way split), many small tiles,
    #   ragged N (scalar tail) + partial last block, bf16 native streaming.
    cases = [
        (4096, None, jnp.float32),
        (4096, 2048, jnp.float32),
        (4096, 16, jnp.float32),
        (16384, None, jnp.float32),
        (1000, 8, jnp.float32),
        (1000, 24, jnp.float32),
        (8192, None, jnp.bfloat16),
    ]

    for n, tr, dt in cases:
        key, ka, kb = jax.random.split(key, 3)
        out_boxes = make_boxes(ka, n, dt)
        tgt_boxes = make_boxes(kb, n, dt)
        got = jax.block_until_ready(_box_loss_pallas(out_boxes, tgt_boxes, tile_r=tr))
        ref = jax.block_until_ready(_box_loss_ref(out_boxes, tgt_boxes))
        # Tolerance covers the EUP approx-reciprocal vs exact divide; structural bugs
        # (wrong lanes/mask/divisor) are orders of magnitude larger than 1e-3.
        assert jnp.allclose(got, ref, atol=1e-3, rtol=1e-3), (n, tr, dt, float(got), float(ref))

    # Public wrapper: small-N pure-JAX fallback and the Pallas path.
    small_out = make_boxes(jax.random.PRNGKey(1), 8)
    small_tgt = make_boxes(jax.random.PRNGKey(2), 8)
    got_small = jax.block_until_ready(box_loss(small_out, small_tgt))
    ref_small = jax.block_until_ready(_box_loss_ref(small_out, small_tgt))
    assert jnp.allclose(got_small, ref_small, atol=1e-5, rtol=1e-5), (float(got_small), float(ref_small))

    big_out = make_boxes(jax.random.PRNGKey(3), 4096)
    big_tgt = make_boxes(jax.random.PRNGKey(4), 4096)
    got_big = jax.block_until_ready(box_loss(big_out, big_tgt))
    ref_big = jax.block_until_ready(_box_loss_ref(big_out, big_tgt))
    assert jnp.allclose(got_big, ref_big, atol=1e-3, rtol=1e-3), (float(got_big), float(ref_big))

    print("KERNEL_OK")
</pallas_src>

<mosaic_0001>
module attributes {stable_mosaic.version = 11 : i64} {
  func.func @_box_loss_kernel(%arg0: i32, %arg1: memref<32x128xf32, #tpu.memory_space<vmem>>, %arg2: memref<32x128xf32, #tpu.memory_space<vmem>>, %arg3: memref<1x1x128xf32, #tpu.memory_space<vmem>>) attributes {dimension_semantics = [#tpu.dimension_semantics<parallel>], iteration_bounds = array<i64: 4>, scalar_prefetch = 0 : i64, scratch_operands = 0 : i64, tpu.core_type = #tpu.core_type<tc>, window_params = [{transform_indices = @transform_0, window_bounds = array<i64: 32, 128>}, {transform_indices = @transform_1, window_bounds = array<i64: 32, 128>}, {transform_indices = @transform_2, window_bounds = array<i64: 1, 1, 128>}]} {
    %c0 = arith.constant 0 : index
    %c0_0 = arith.constant 0 : index
    %0 = vector.load %arg1[%c0, %c0_0] : memref<32x128xf32, #tpu.memory_space<vmem>>, vector<32x128xf32>
    %c0_1 = arith.constant 0 : index
    %c0_2 = arith.constant 0 : index
    %1 = vector.load %arg2[%c0_1, %c0_2] : memref<32x128xf32, #tpu.memory_space<vmem>>, vector<32x128xf32>
    %c126_i32 = arith.constant 126 : i32
    %2 = tpu.dynamic_rotate %0 by %c126_i32 dim 1 : vector<32x128xf32>, i32 -> vector<32x128xf32>
    %c126_i32_3 = arith.constant 126 : i32
    %3 = tpu.dynamic_rotate %1 by %c126_i32_3 dim 1 : vector<32x128xf32>, i32 -> vector<32x128xf32>
    %4 = arith.minimumf %2, %3 : vector<32x128xf32>
    %5 = arith.maximumf %0, %1 : vector<32x128xf32>
    %6 = arith.subf %4, %5 : vector<32x128xf32>
    %cst = arith.constant 0.000000e+00 : f32
    %7 = vector.broadcast %cst : f32 to vector<32x128xf32>
    %8 = arith.maximumf %6, %7 : vector<32x128xf32>
    %c127_i32 = arith.constant 127 : i32
    %9 = tpu.dynamic_rotate %8 by %c127_i32 dim 1 : vector<32x128xf32>, i32 -> vector<32x128xf32>
    %10 = arith.mulf %8, %9 : vector<32x128xf32>
    %11 = arith.subf %2, %0 : vector<32x128xf32>
    %12 = arith.subf %3, %1 : vector<32x128xf32>
    %c127_i32_4 = arith.constant 127 : i32
    %13 = tpu.dynamic_rotate %11 by %c127_i32_4 dim 1 : vector<32x128xf32>, i32 -> vector<32x128xf32>
    %14 = arith.mulf %11, %13 : vector<32x128xf32>
    %c127_i32_5 = arith.constant 127 : i32
    %15 = tpu.dynamic_rotate %12 by %c127_i32_5 dim 1 : vector<32x128xf32>, i32 -> vector<32x128xf32>
    %16 = arith.mulf %12, %15 : vector<32x128xf32>
    %17 = arith.addf %14, %16 : vector<32x128xf32>
    %18 = arith.subf %17, %10 : vector<32x128xf32>
    %cst_6 = arith.constant 1.000000e-07 : f32
    %19 = vector.broadcast %cst_6 : f32 to vector<32x128xf32>
    %20 = arith.addf %18, %19 : vector<32x128xf32>
    %21 = tpu.reciprocal %20 {approx = true} : vector<32x128xf32> -> vector<32x128xf32>
    %22 = arith.mulf %10, %21 : vector<32x128xf32>
    %23 = tpu.iota {dimensions = array<i32: 1>} : vector<1x128xi32>
    %c4_i32 = arith.constant 4 : i32
    %c0_i32 = arith.constant 0 : i32
    %24 = arith.cmpi eq, %c4_i32, %c0_i32 : i32
    %c1_i32 = arith.constant 1 : i32
    %25 = arith.select %24, %c1_i32, %c4_i32 : i32
    %26 = vector.broadcast %25 : i32 to vector<1x128xi32>
    %27 = arith.remsi %23, %26 : vector<1x128xi32>
    %c0_i32_7 = arith.constant 0 : i32
    %28 = vector.broadcast %c0_i32_7 : i32 to vector<1x128xi32>
    %29 = arith.cmpi ne, %27, %28 : vector<1x128xi32>
    %c0_i32_8 = arith.constant 0 : i32
    %30 = vector.broadcast %c0_i32_8 : i32 to vector<1x128xi32>
    %31 = arith.cmpi slt, %27, %30 : vector<1x128xi32>
    %c0_i32_9 = arith.constant 0 : i32
    %32 = arith.cmpi slt, %25, %c0_i32_9 : i32
    %33 = vector.broadcast %32 : i1 to vector<1x128xi1>
    %34 = vector.broadcast %33 : vector<1x128xi1> to vector<1x128xi1>
    %35 = arith.xori %31, %34 : vector<1x128xi1>
    %36 = arith.andi %35, %29 : vector<1x128xi1>
    %37 = vector.broadcast %25 : i32 to vector<1x128xi32>
    %38 = arith.addi %27, %37 : vector<1x128xi32>
    %39 = arith.select %36, %38, %27 : vector<1x128xi1>, vector<1x128xi32>
    %c0_i32_10 = arith.constant 0 : i32
    %40 = vector.broadcast %c0_i32_10 : i32 to vector<1x128xi32>
    %41 = arith.cmpi eq, %39, %40 : vector<1x128xi32>
    %cst_11 = arith.constant 0.000000e+00 : f32
    %42 = vector.shape_cast %41 : vector<1x128xi1> to vector<1x128xi1>
    %43 = vector.broadcast %42 : vector<1x128xi1> to vector<32x128xi1>
    %44 = vector.broadcast %cst_11 : f32 to vector<32x128xf32>
    %45 = arith.select %43, %22, %44 : vector<32x128xi1>, vector<32x128xf32>
    %cst_12 = arith.constant dense<0.000000e+00> : vector<128xf32>
    %46 = vector.multi_reduction <add>, %45, %cst_12 [0] : vector<32x128xf32> to vector<128xf32>
    %47 = vector.shape_cast %46 : vector<128xf32> to vector<1x128xf32>
    %c0_13 = arith.constant 0 : index
    %c0_14 = arith.constant 0 : index
    %c0_15 = arith.constant 0 : index
    %48 = vector.load %arg3[%c0_13, %c0_14, %c0_15] : memref<1x1x128xf32, #tpu.memory_space<vmem>>, vector<1x1x128xf32>
    %49 = vector.shape_cast %48 : vector<1x1x128xf32> to vector<1x128xf32>
    %50 = vector.shape_cast %47 : vector<1x128xf32> to vector<1x1x128xf32>
    tpu.vector_store %arg3[%c0_13, %c0_14, %c0_15], %50 {strides = array<i32>} : memref<1x1x128xf32, #tpu.memory_space<vmem>>, vector<1x1x128xf32>,
    return
  }
  func.func @transform_0(%arg0: i32) -> (i32, i32) {
    %c0_i32 = arith.constant 0 : i32
    %c0_i32_0 = arith.constant 0 : i32
    return %arg0, %c0_i32 : i32, i32
  }
  func.func @transform_1(%arg0: i32) -> (i32, i32) {
    %c0_i32 = arith.constant 0 : i32
    %c0_i32_0 = arith.constant 0 : i32
    return %arg0, %c0_i32 : i32, i32
  }
  func.func @transform_2(%arg0: i32) -> (i32, i32, i32) {
    %c0_i32 = arith.constant 0 : i32
    %c0_i32_0 = arith.constant 0 : i32
    %c0_i32_1 = arith.constant 0 : i32
    return %arg0, %c0_i32, %c0_i32_0 : i32, i32, i32
  }
}

</mosaic_0001>

<bundles_post_ra>
// kernel: _box_loss_pallas.1
= control target key start
LH: loop header
LB: loop body
LE: loop exit
PB: predicated region body
PF: predicated region fallthrough
CT: control target
= control target key end

     0   :  { %s412_s9 = smov 0   ;;  %s449_s0 = inlined_call_operand.vmem [shape: f32[128,128], index: 0, kind: input, shape index: {}]   ;;  %s450_s1 = inlined_call_operand.vmem [shape: f32[128,128], index: 1, kind: input, shape index: {}]   ;;  %s451_s2 = inlined_call_operand.vmem [shape: f32[4,1,128], index: 2, kind: output, shape index: {}]  }
   0x1 LB: > { %s418_s10 = sadd.s32 4294967295, %s393_s9   ;;  %p362_p0 = scmp.ge.s32.totalorder %s393_s9, 1  ;;  %s393_s9 = sphi %s412_s9, %s12_s9  }
   0x2   : > { %p124_p1 = scmp.lt.s32.totalorder %s393_s9, 5 }
   0x4   : > { %p125_p2 = pnand %p362_p0, %p124_p1 }
   0x5   : > { %s363_s11 = sshll.u32 (!%p125_p2), %s418_s10, 2  ;;  %s395_s19 = smov (!%p125_p2), 126  }
   0x6   : > { %128 = sbr.rel (%p125_p2) target bundleno = 309 (0x135), region = 28  ;;  %p150_p3 = scmp.lt.s32.totalorder (!%p125_p2), %s363_s11, 15 }
   0x7   : > { %s396_s20 = smov (!%p125_p2), 127   ;;  %p161_p4 = scmp.lt.s32.totalorder (!%p125_p2), %s418_s10, 3 }
   0xd   : > { %s453_s11 = smov (!%p150_p3, %s363_s11), 15  ;;  %s455_s10 = smov (!%p161_p4, %s418_s10), 3 }
   0xe   : > { %s364_s12 = sshll.u32 %s453_s11, 3  ;;  %s163_s23 = scalar_lea.vmem %s451_s2, %s455_s10 }
   0xf   : > { %s159_s15 = scalar_lea.vmem %s450_s1, %s364_s12  ;;  %s153_s18 = scalar_lea.vmem %s449_s0, %s364_s12 }
  0x10   : > { %v168_v0 = vld [vmem:[%s159_s15] sm:$0xff]  ;;  %v169_v2 = vld [vmem:[%s159_s15 + $0x8] sm:$0xff]  ;;  %v166_v4 = vld [vmem:[%s153_s18 + $0x10] sm:$0xff] }
  0x11   : > { %v164_v1 = vld [vmem:[%s153_s18] sm:$0xff]  ;;  %180 = vrot.lane.b32.xlu1 %v168_v0, %s395_s19  ;;  %v165_v3 = vld [vmem:[%s153_s18 + $0x8] sm:$0xff]  ;;  %v170_v5 = vld [vmem:[%s159_s15 + $0x10] sm:$0xff] }
  0x12   : > { %172 = vrot.lane.b32.xlu0 %v164_v1, %s395_s19  ;;  %v171_v6 = vld [vmem:[%s159_s15 + $0x18] sm:$0xff]  ;;  %v192_v14 = vmax.f32 %v164_v1, %v168_v0  ;;  %v194_v20 = vmax.f32 %v166_v4, %v170_v5  ;;  %v193_v26 = vmax.f32 %v165_v3, %v169_v2 }
  0x13   : > { %v167_v7 = vld [vmem:[%s153_s18 + $0x18] sm:$0xff] }
  0x14   : > { %v195_v32 = vmax.f32 %v167_v7, %v171_v6 }
  0x15   : > { %182 = vrot.lane.b32.xlu1 %v169_v2, %s395_s19 }
  0x16   : > { %174 = vrot.lane.b32.xlu0 %v165_v3, %s395_s19 }
  0x19   : > { %184 = vrot.lane.b32.xlu1 %v170_v5, %s395_s19 }
  0x1a   : > { %176 = vrot.lane.b32.xlu0 %v166_v4, %s395_s19 }
  0x1d   : > { %186 = vrot.lane.b32.xlu1 %v171_v6, %s395_s19 }
  0x1e   : > { %178 = vrot.lane.b32.xlu0 %v167_v7, %s395_s19 }
  0x83   : > { %v181_v8 = vpop.permute.xlu1 %180 }
  0x84   : > { %v173_v9 = vpop.permute.xlu0 %172  ;;  %v220_v11 = vsub.f32 %v181_v8, %v168_v0 }
  0x85   : > { %v216_v10 = vsub.f32 %v173_v9, %v164_v1  ;;  %v188_v15 = vmin.f32 %v173_v9, %v181_v8 }
  0x87   : > { %224 = vrot.lane.b32.xlu0 %v216_v10, %s396_s20  ;;  %v183_v12 = vpop.permute.xlu1 %182  ;;  %v196_v21 = vsub.f32 %v188_v15, %v192_v14 }
  0x88   : > { %v175_v13 = vpop.permute.xlu0 %174  ;;  %v221_v17 = vsub.f32 %v183_v12, %v169_v2 }
  0x89   : > { %v217_v16 = vsub.f32 %v175_v13, %v165_v3  ;;  %v189_v27 = vmin.f32 %v175_v13, %v183_v12  ;;  %v200_v29 = vmax.f32 %v196_v21, 0.0 }
  0x8b   : > { %236 = vrot.lane.b32.xlu0 %v220_v11, %s396_s20  ;;  %226 = vrot.lane.b32.xlu1 %v217_v16, %s396_s20  ;;  %v185_v19 = vpop.permute.xlu1 %184  ;;  %v197_v33 = vsub.f32 %v189_v27, %v193_v26 }
  0x8c   : > { %v177_v18 = vpop.permute.xlu0 %176  ;;  %v222_v24 = vsub.f32 %v185_v19, %v170_v5 }
  0x8d   : > { %v218_v22 = vsub.f32 %v177_v18, %v166_v4  ;;  %v190_v23 = vmin.f32 %v177_v18, %v185_v19  ;;  %v201_v38 = vmax.f32 %v197_v33, 0.0 }
  0x8f   : > { %238 = vrot.lane.b32.xlu1 %v221_v17, %s396_s20  ;;  %228 = vrot.lane.b32.xlu0 %v218_v22, %s396_s20  ;;  %v198_v28 = vsub.f32 %v190_v23, %v194_v20  ;;  %v187_v30 = vpop.permute.xlu1 %186 }
  0x90   : > { %v179_v25 = vpop.permute.xlu0 %178  ;;  %v223_v36 = vsub.f32 %v187_v30, %v171_v6  ;;  %v268_v6 = vlaneseq }
  0x91   : > { %v219_v31 = vsub.f32 %v179_v25, %v167_v7  ;;  %v191_v34 = vmin.f32 %v179_v25, %v187_v30  ;;  %v202_v35 = vmax.f32 %v198_v28, 0.0 }
  0x92   : > { %v269_v12 = vand.u32 127, %v268_v6 }
  0x93   : > { %240 = vrot.lane.b32.xlu1 %v222_v24, %s396_s20  ;;  %204 = vrot.lane.b32.xlu0 %v200_v29, %s396_s20  ;;  %v199_v37 = vsub.f32 %v191_v34, %v195_v32 }
  0x94   : > { %v274_v15 = vand.u32 3, %v269_v12 }
  0x95   : > { %v203_v39 = vmax.f32 %v199_v37, 0.0 }
  0x96   : > { %vm282_vm0 = vcmp.eq.s32.totalorder %v274_v15, 0 }
  0x97   : > { %230 = vrot.lane.b32.xlu1 %v219_v31, %s396_s20  ;;  %208 = vrot.lane.b32.xlu0 %v202_v35, %s396_s20 }
  0x9b   : > { %206 = vrot.lane.b32.xlu1 %v201_v38, %s396_s20  ;;  %242 = vrot.lane.b32.xlu0 %v223_v36, %s396_s20 }
  0x9f   : > { %210 = vrot.lane.b32.xlu1 %v203_v39, %s396_s20 }
  0xf9   : > { %v225_v40 = vpop.permute.xlu0 %224 }
  0xfa   : > { %v232_v46 = vmul.f32 %v225_v40, %v216_v10 }
  0xfd   : > { %v227_v41 = vpop.permute.xlu1 %226  ;;  %v237_v42 = vpop.permute.xlu0 %236 }
  0xfe   : > { %v244_v45 = vmul.f32 %v237_v42, %v220_v11  ;;  %v233_v59 = vmul.f32 %v227_v41, %v217_v16 }
 0x100   : > { %v248_v49 = vadd.f32 %v244_v45, %v232_v46 }
 0x101   : > { %v239_v43 = vpop.permute.xlu1 %238  ;;  %v229_v44 = vpop.permute.xlu0 %228 }
 0x102   : > { %v234_v52 = vmul.f32 %v229_v44, %v218_v22  ;;  %v245_v56 = vmul.f32 %v239_v43, %v221_v17 }
 0x104   : > { %v249_v0 = vadd.f32 %v245_v56, %v233_v59 }
 0x105   : > { %v241_v47 = vpop.permute.xlu1 %240  ;;  %v205_v48 = vpop.permute.xlu0 %204 }
 0x106   : > { %v246_v50 = vmul.f32 %v241_v47, %v222_v24  ;;  %v212_v51 = vmul.f32 %v205_v48, %v200_v29 }
 0x108   : > { %v252_v53 = vsub.f32 %v248_v49, %v212_v51  ;;  %v250_v57 = vadd.f32 %v246_v50, %v234_v52 }
 0x109   : > { %v231_v54 = vpop.permute.xlu1 %230  ;;  %v209_v55 = vpop.permute.xlu0 %208 }
 0x10a   : > { %v214_v58 = vmul.f32 %v209_v55, %v202_v35  ;;  %v256_v60 = vadd.f32 1e-07, %v252_v53  ;;  %v235_v4 = vmul.f32 %v231_v54, %v219_v31 }
 0x10c   : > { %v254_v61 = vsub.f32 %v250_v57, %v214_v58  ;;  %379 = vrcp.f32 %v256_v60 }
 0x10d   : > { %v207_v62 = vpop.permute.xlu1 %206  ;;  %v243_v63 = vpop.permute.xlu0 %242 }
 0x10e   : > { %v258_v1 = vadd.f32 1e-07, %v254_v61  ;;  %v213_v2 = vmul.f32 %v207_v62, %v201_v38  ;;  %v247_v3 = vmul.f32 %v243_v63, %v223_v36 }
 0x110   : > { %v253_v5 = vsub.f32 %v249_v0, %v213_v2  ;;  %381 = vrcp.f32 %v258_v1  ;;  %v251_v9 = vadd.f32 %v247_v3, %v235_v4 }
 0x111   : > { %v211_v7 = vpop.permute.xlu1 %210 }
 0x112   : > { %v257_v8 = vadd.f32 1e-07, %v253_v5  ;;  %v215_v10 = vmul.f32 %v211_v7, %v203_v39 }
 0x114   : > { %383 = vrcp.f32 %v257_v8  ;;  %v255_v11 = vsub.f32 %v251_v9, %v215_v10 }
 0x116   : > { %v259_v13 = vadd.f32 1e-07, %v255_v11  ;;  %v380_v14 = vpop.eup %379 }
 0x117   : > { %v264_v17 = vmul.f32 %v380_v14, %v212_v51 }
 0x118   : > { %385 = vrcp.f32 %v259_v13 }
 0x119   : > { %v285_v21 = vsel %vm282_vm0, %v264_v17, 0.0 }
 0x11a   : > { %v382_v16 = vpop.eup %381 }
 0x11b   : > { %v266_v19 = vmul.f32 %v382_v16, %v214_v58 }
 0x11d   : > { %v287_v25 = vsel %vm282_vm0, %v266_v19, 0.0 }
 0x11e   : > { %v384_v18 = vpop.eup %383 }
 0x11f   : > { %v265_v20 = vmul.f32 %v384_v18, %v213_v2 }
 0x121   : > { %v286_v22 = vsel %vm282_vm0, %v265_v20, 0.0 }
 0x122   : > { %v386_v23 = vpop.eup %385  ;;  %v289_v24 = vadd.f32 %v286_v22, %v285_v21 }
 0x123   : > { %v267_v26 = vmul.f32 %v386_v23, %v215_v10 }
 0x124   : > { %v290_v27 = vadd.f32 %v289_v24, %v287_v25 }
 0x125   : > { %v288_v28 = vsel %vm282_vm0, %v267_v26, 0.0 }
 0x126   : > { %v291_v29 = vadd.f32 %v290_v27, %v288_v28 }
 0x128   : > { %v292_v30 = vrot.slane %v291_v29, 4 }
 0x12a   : > { %v293_v31 = vadd.f32 %v292_v30, %v291_v29 }
 0x12c   : > { %v294_v32 = vrot.slane %v293_v31, 2 }
 0x12e   : > { %v295_v33 = vadd.f32 %v294_v32, %v293_v31 }
 0x130   : > { %v296_v34 = vrot.slane %v295_v33, 1 }
 0x132   : > { %v297_v35 = vadd.f32 %v296_v34, %v295_v33 }
 0x134   : > { %298 = vst [vmem:[%s163_s23] sm:$0x1] %v297_v35 }
 0x135 PF: > { %s12_s9 = sadd.s32 1, %s393_s9  }
 0x136   : > { %p9_p5 = scmp.ge.s32.totalorder %s12_s9, 6  }
 0x138   :  { %11 = sbr.rel (!%p9_p5) target bundleno = 1 (0x1), region = 61 }

</bundles_post_ra>
